<compile_context>
chip_gen: v6e
topology: v6e:2x2x1
jax: 0.10.0
libtpu: 0.0.40
codegen_flags: <defaults>
</compile_context>

<pallas_src>
import jax
import jax.numpy as jnp
from jax import lax
from jax.experimental import pallas as pl
from jax.experimental.pallas import tpu as pltpu


def _make_infonce_kernel(temperature, total_count, c_valid, c_pad):
    # Python floats/ints only: jnp scalars here would be captured constants and
    # abort kernel tracing ("captures constants ... pass them as inputs").
    inv_t = 1.0 / float(temperature)
    inv_count = 1.0 / float(total_count)
    # inputs are L2-normalized in-kernel so |logit| <= 1/T; only for extreme
    # temperatures is a row-max subtraction needed to keep exp() in f32 range.
    stable = inv_t > 60.0

    def kernel(zp_ref, zct_ref, gt_ref, out_ref, zcn_ref, acc_ref):
        s = pl.program_id(1)

        # ---- hoisted once per core: normalize z_c^T into a resident VMEM scratch
        @pl.when(s == 0)
        def _init():
            zc = zct_ref[...].astype(jnp.float32)                    # (D, C_pad)
            sq = jnp.sum(zc * zc, axis=0, keepdims=True)             # (1, C_pad)
            zc = zc * lax.rsqrt(jnp.maximum(sq, 1e-24))              # F.normalize
            zcn_ref[...] = zc.astype(zcn_ref.dtype)                  # bf16 MXU copy
            acc_ref[...] = jnp.zeros(acc_ref.shape, acc_ref.dtype)

        # ---- per row-tile work ------------------------------------------------
        zp = zp_ref[...].astype(jnp.float32)                         # (rb, D)
        sq = jnp.sum(zp * zp, axis=-1, keepdims=True)
        zp = zp * lax.rsqrt(jnp.maximum(sq, 1e-24))                  # F.normalize

        gt = gt_ref[...].astype(jnp.float32)                         # (rb, C_pad)

        # MXU matmul (bf16 operands by default, f32 accumulation): (rb,D)@(D,C_pad)
        c_sim = jnp.dot(zp.astype(zcn_ref.dtype), zcn_ref[...],
                        preferred_element_type=jnp.float32) * inv_t  # (rb, C_pad)

        if stable:
            m = jnp.max(c_sim, axis=-1, keepdims=True)
            e = jnp.exp(c_sim - m)
        else:
            m = None
            e = jnp.exp(c_sim)
        if c_pad != c_valid:
            # padded (zero) z_c columns would add exp(0)=1 to the denominator
            col = lax.broadcasted_iota(jnp.int32, (1, c_pad), 1)
            e = jnp.where(col < c_valid, e, 0.0)
        log_den = jnp.log(jnp.sum(e, axis=-1, keepdims=True))        # (rb, 1)
        if stable:
            log_den = log_den + m

        # sum_j gt_ij * (log_den_i - s_ij), accumulated per row; the cross-sublane
        # reduce to a scalar is deferred to the last-step epilogue.
        gt_row = jnp.sum(gt, axis=-1, keepdims=True)                 # (rb, 1)
        gt_dot = jnp.sum(gt * c_sim, axis=-1, keepdims=True)         # (rb, 1)
        acc_ref[...] += log_den * gt_row - gt_dot

        @pl.when(s == pl.num_programs(1) - 1)
        def _finalize():
            total = jnp.sum(acc_ref[...]) * inv_count
            out_ref[...] = jnp.broadcast_to(total, out_ref.shape).astype(out_ref.dtype)

    return kernel


def supervised_text_modal_infonce(z_p, z_c, gt_label, temperature=0.07, *,
                                  row_block=None, core_splits=None,
                                  use_bf16_matmul=True, vmem_budget_bytes=None):
    P, D = z_p.shape
    C, Dc = z_c.shape
    assert D == Dc, "feature dims must match"
    assert gt_label.shape == (P, C), "gt_label must be (P, C)"

    f32 = 4
    in_bytes = jnp.dtype(z_p.dtype).itemsize
    gt_bytes = jnp.dtype(gt_label.dtype).itemsize
    mm_dtype = jnp.bfloat16 if use_bf16_matmul else jnp.float32
    mm_bytes = jnp.dtype(mm_dtype).itemsize

    # Lane-pad the class dim so every (rb, C) VPU/EUP op is lane-dense; padded
    # columns are masked in-kernel.  D stays unpadded (contracted dim; full-extent
    # blocks are allowed for any size and padding it would inflate HBM traffic).
    C_pad = ((C + 127) // 128) * 128

    # ---------- VMEM budget -> row_block (per-generation aware) ----------------
    if vmem_budget_bytes is None:
        try:
            phys = pltpu.get_tpu_info().vmem_capacity_bytes   # 128MiB v5e/v6e, 64MiB v7x
        except Exception:
            phys = 64 << 20                                   # conservative fallback
        vmem_budget_bytes = min(int(phys) * 3 // 4, 96 << 20)

    per_row = (2 * D * in_bytes          # z_p tile (double-buffered)
               + 2 * C_pad * gt_bytes    # gt tile (double-buffered, dominant stream)
               + 4 * C_pad * f32         # f32 temporaries: c_sim / exp / gt / mask
               + 2 * D * f32             # normalized z_p + MXU copy
               + 128 * f32)              # (rb, 1) accumulator row (lane-padded)
    fixed = (2 * D * C_pad * in_bytes    # z_c^T input (fetched once; default 2 bufs)
             + D * C_pad * mm_bytes      # normalized z_c scratch
             + 2 * 8 * 128 * f32         # output blocks
             + (2 << 20))                # headroom
    # TODO(synk): single-buffer the resident z_c^T input (pl.Buffered(1) or a
    # pl.ANY ref + one-shot DMA) to reclaim D*C_pad*in_bytes of VMEM once that
    # path is verified on all target lowerings.
    avail = vmem_budget_bytes - fixed
    rb_cap = max(avail // per_row, 8) if avail > 0 else 8

    if row_block is None:
        rb = int(min(rb_cap, 1024))
        if rb >= 256:
            rb = (rb // 256) * 256
        elif rb >= 128:
            rb = 128
        else:
            rb = max((rb // 8) * 8, 8)
        rb = min(rb, ((P + 7) // 8) * 8)     # never bigger than the batch itself
        row_block = max(rb, 8)
    row_block = max(8, (int(row_block) // 8) * 8)

    n_tiles = pl.cdiv(P, row_block)
    if core_splits is None:
        core_splits = 2 if n_tiles >= 2 else 1     # both TensorCores on v7x
    n_tiles = pl.cdiv(n_tiles, core_splits) * core_splits
    tiles_per_core = n_tiles // core_splits
    P_pad = n_tiles * row_block

    # Padding: extra rows carry gt == 0 so they contribute nothing; extra class
    # columns are masked out of the softmax denominator in-kernel.
    if P_pad != P:
        z_p = jnp.pad(z_p, ((0, P_pad - P), (0, 0)))
    if P_pad != P or C_pad != C:
        gt_label = jnp.pad(gt_label, ((0, P_pad - P), (0, C_pad - C)))
    z_c_t = z_c.T                                   # (D, C) layout plumbing only
    if C_pad != C:
        z_c_t = jnp.pad(z_c_t, ((0, 0), (0, C_pad - C)))

    # TODO(synk): when gt_label is known to be one-hot, pass class indices via
    # scalar prefetch instead of streaming the dense (P, C) array (kept dense here
    # to preserve the module's arbitrary-weight semantics).
    kernel = _make_infonce_kernel(temperature, P * C, C, C_pad)

    S = tiles_per_core
    grid = (core_splits, S)

    cost = pl.CostEstimate(
        flops=2 * P_pad * C_pad * D,
        transcendentals=P_pad * C_pad + 2 * P_pad,
        bytes_accessed=(P_pad * D + C_pad * D) * in_bytes
                       + P_pad * C_pad * gt_bytes + core_splits * 8 * 128 * f32,
    )

    out = pl.pallas_call(
        kernel,
        out_shape=jax.ShapeDtypeStruct((core_splits, 8, 128), jnp.float32),
        grid_spec=pltpu.PrefetchScalarGridSpec(
            num_scalar_prefetch=0,
            grid=grid,
            in_specs=[
                pl.BlockSpec((row_block, D), lambda c, s: (c * S + s, 0)),
                pl.BlockSpec((D, C_pad), lambda c, s: (0, 0)),   # resident, fetched once
                pl.BlockSpec((row_block, C_pad), lambda c, s: (c * S + s, 0)),
            ],
            out_specs=pl.BlockSpec((1, 8, 128), lambda c, s: (c, 0, 0)),
            scratch_shapes=[
                pltpu.VMEM((D, C_pad), mm_dtype),          # normalized z_c^T (step-0)
                pltpu.VMEM((row_block, 1), jnp.float32),   # per-row partial-loss acc
            ],
        ),
        compiler_params=pltpu.CompilerParams(
            dimension_semantics=("parallel", "arbitrary"),
            vmem_limit_bytes=int(min(vmem_budget_bytes + (8 << 20), 100 << 20)),
        ),
        cost_estimate=cost,
    )(z_p, z_c_t, gt_label)

    # one lane-dense partial per core; sum them and we are done
    return jnp.sum(out[:, 0, 0])


def _reference_loss(z_p, z_c, gt_label, temperature=0.07):
    # pure-JAX reference mirroring the PyTorch forward
    def l2n(x):
        return x / jnp.maximum(jnp.linalg.norm(x, axis=-1, keepdims=True), 1e-12)

    z_p = l2n(z_p.astype(jnp.float32))
    z_c = l2n(z_c.astype(jnp.float32))
    c_sim = z_p @ z_c.T / temperature
    exp_sim = jnp.exp(c_sim)
    l_bp = exp_sim / exp_sim.sum(1, keepdims=True)
    return jnp.mean(-jnp.log(l_bp) * gt_label)


if __name__ == "__main__":
    key = jax.random.PRNGKey(0)
    kp, kc, kg = jax.random.split(key, 3)
    P, C, D = 16, 8, 32
    z_p = jax.random.normal(kp, (P, D), dtype=jnp.float32)
    z_c = jax.random.normal(kc, (C, D), dtype=jnp.float32)
    labels = jax.random.randint(kg, (P,), 0, C)
    gt_label = jax.nn.one_hot(labels, C, dtype=jnp.float32)

    ref = _reference_loss(z_p, z_c, gt_label, temperature=0.07)

    # default path: auto row_block / core split, bf16 MXU operands
    loss = supervised_text_modal_infonce(z_p, z_c, gt_label, temperature=0.07)
    jax.block_until_ready(loss)
    assert jnp.allclose(loss, ref, rtol=5e-2, atol=5e-2), (loss, ref)

    # exact-f32 path exercising the multi-tile grid and the two-core split
    loss_f32 = supervised_text_modal_infonce(
        z_p, z_c, gt_label, temperature=0.07,
        row_block=8, core_splits=2, use_bf16_matmul=False)
    jax.block_until_ready(loss_f32)
    assert jnp.allclose(loss_f32, ref, rtol=1e-4, atol=1e-4), (loss_f32, ref)

    # non-divisible batch -> zero-gt row padding path
    zp13, gt13 = z_p[:13], gt_label[:13]
    ref13 = _reference_loss(zp13, z_c, gt13, temperature=0.07)
    loss13 = supervised_text_modal_infonce(
        zp13, z_c, gt13, temperature=0.07, row_block=8, use_bf16_matmul=False)
    jax.block_until_ready(loss13)
    assert jnp.allclose(loss13, ref13, rtol=1e-4, atol=1e-4), (loss13, ref13)

    print("KERNEL_OK")
</pallas_src>

<mosaic_0001>
module attributes {stable_mosaic.version = 11 : i64} {
  func.func @kernel(%arg0: i32, %arg1: i32, %arg2: memref<16x32xf32, #tpu.memory_space<vmem>>, %arg3: memref<32x128xf32, #tpu.memory_space<vmem>>, %arg4: memref<16x128xf32, #tpu.memory_space<vmem>>, %arg5: memref<1x8x128xf32, #tpu.memory_space<vmem>>, %arg6: memref<32x128xbf16, #tpu.memory_space<vmem>>, %arg7: memref<16x1xf32, #tpu.memory_space<vmem>>) attributes {dimension_semantics = [#tpu.dimension_semantics<parallel>, #tpu.dimension_semantics<arbitrary>], iteration_bounds = array<i64: 1, 1>, scalar_prefetch = 0 : i64, scratch_operands = 2 : i64, tpu.core_type = #tpu.core_type<tc>, window_params = [{transform_indices = @transform_0, window_bounds = array<i64: 16, 32>}, {pipeline_mode = #tpu.pipeline_mode<synchronous>, transform_indices = @transform_1, window_bounds = array<i64: 32, 128>}, {transform_indices = @transform_2, window_bounds = array<i64: 16, 128>}, {transform_indices = @transform_3, window_bounds = array<i64: 1, 8, 128>}]} {
    %c0_i32 = arith.constant 0 : i32
    %0 = arith.cmpi eq, %arg1, %c0_i32 : i32
    %1 = arith.extui %0 : i1 to i32
    %c0_i32_0 = arith.constant 0 : i32
    %2 = arith.cmpi ne, %1, %c0_i32_0 : i32
    scf.if %2 {
      %c0_19 = arith.constant 0 : index
      %c0_20 = arith.constant 0 : index
      %42 = vector.load %arg3[%c0_19, %c0_20] : memref<32x128xf32, #tpu.memory_space<vmem>>, vector<32x128xf32>
      %43 = arith.mulf %42, %42 : vector<32x128xf32>
      %cst_21 = arith.constant dense<0.000000e+00> : vector<128xf32>
      %44 = vector.multi_reduction <add>, %43, %cst_21 [0] : vector<32x128xf32> to vector<128xf32>
      %45 = vector.shape_cast %44 : vector<128xf32> to vector<1x128xf32>
      %cst_22 = arith.constant 1.000000e-24 : f32
      %46 = vector.broadcast %cst_22 : f32 to vector<1x128xf32>
      %47 = arith.maximumf %45, %46 : vector<1x128xf32>
      %48 = math.rsqrt %47 : vector<1x128xf32>
      %49 = vector.broadcast %48 : vector<1x128xf32> to vector<32x128xf32>
      %50 = arith.mulf %42, %49 : vector<32x128xf32>
      %51 = arith.truncf %50 : vector<32x128xf32> to vector<32x128xbf16>
      %c0_23 = arith.constant 0 : index
      %c0_24 = arith.constant 0 : index
      %52 = vector.load %arg6[%c0_23, %c0_24] : memref<32x128xbf16, #tpu.memory_space<vmem>>, vector<32x128xbf16>
      tpu.vector_store %arg6[%c0_23, %c0_24], %51 {strides = array<i32>} : memref<32x128xbf16, #tpu.memory_space<vmem>>, vector<32x128xbf16>,
      %cst_25 = arith.constant 0.000000e+00 : f32
      %53 = vector.broadcast %cst_25 : f32 to vector<16x1xf32>
      %c0_26 = arith.constant 0 : index
      %c0_27 = arith.constant 0 : index
      %54 = vector.load %arg7[%c0_26, %c0_27] : memref<16x1xf32, #tpu.memory_space<vmem>>, vector<16x1xf32>
      tpu.vector_store %arg7[%c0_26, %c0_27], %53 {strides = array<i32>} : memref<16x1xf32, #tpu.memory_space<vmem>>, vector<16x1xf32>,
    } else {
    }
    %c0 = arith.constant 0 : index
    %c0_1 = arith.constant 0 : index
    %3 = vector.load %arg2[%c0, %c0_1] : memref<16x32xf32, #tpu.memory_space<vmem>>, vector<16x32xf32>
    %4 = arith.mulf %3, %3 : vector<16x32xf32>
    %cst = arith.constant dense<0.000000e+00> : vector<16xf32>
    %5 = vector.multi_reduction <add>, %4, %cst [1] : vector<16x32xf32> to vector<16xf32>
    %6 = vector.shape_cast %5 : vector<16xf32> to vector<16x1xf32>
    %cst_2 = arith.constant 1.000000e-24 : f32
    %7 = vector.broadcast %cst_2 : f32 to vector<16x1xf32>
    %8 = arith.maximumf %6, %7 : vector<16x1xf32>
    %9 = math.rsqrt %8 : vector<16x1xf32>
    %10 = vector.broadcast %9 : vector<16x1xf32> to vector<16x32xf32>
    %11 = arith.mulf %3, %10 : vector<16x32xf32>
    %c0_3 = arith.constant 0 : index
    %c0_4 = arith.constant 0 : index
    %12 = vector.load %arg4[%c0_3, %c0_4] : memref<16x128xf32, #tpu.memory_space<vmem>>, vector<16x128xf32>
    %13 = arith.truncf %11 : vector<16x32xf32> to vector<16x32xbf16>
    %c0_5 = arith.constant 0 : index
    %c0_6 = arith.constant 0 : index
    %14 = vector.load %arg6[%c0_5, %c0_6] : memref<32x128xbf16, #tpu.memory_space<vmem>>, vector<32x128xbf16>
    %cst_7 = arith.constant dense<0.000000e+00> : vector<16x128xf32>
    %15 = tpu.matmul %13, %14, %cst_7 {dimension_numbers = #tpu.dot_dimension_numbers<[1], [0], [0], [1], [0, 0, 1, 1], [], []>} : vector<16x32xbf16>, vector<32x128xbf16>, vector<16x128xf32> -> vector<16x128xf32>
    %cst_8 = arith.constant 14.2857141 : f32
    %16 = vector.broadcast %cst_8 : f32 to vector<16x128xf32>
    %17 = arith.mulf %15, %16 : vector<16x128xf32>
    %18 = math.exp %17 : vector<16x128xf32>
    %19 = tpu.iota {dimensions = array<i32: 1>} : vector<1x128xi32>
    %c8_i32 = arith.constant 8 : i32
    %20 = vector.broadcast %c8_i32 : i32 to vector<1x128xi32>
    %21 = arith.cmpi slt, %19, %20 : vector<1x128xi32>
    %cst_9 = arith.constant 0.000000e+00 : f32
    %22 = vector.shape_cast %21 : vector<1x128xi1> to vector<1x128xi1>
    %23 = vector.broadcast %22 : vector<1x128xi1> to vector<16x128xi1>
    %24 = vector.broadcast %cst_9 : f32 to vector<16x128xf32>
    %25 = arith.select %23, %18, %24 : vector<16x128xi1>, vector<16x128xf32>
    %cst_10 = arith.constant dense<0.000000e+00> : vector<16xf32>
    %26 = vector.multi_reduction <add>, %25, %cst_10 [1] : vector<16x128xf32> to vector<16xf32>
    %27 = vector.shape_cast %26 : vector<16xf32> to vector<16x1xf32>
    %28 = math.log %27 : vector<16x1xf32>
    %cst_11 = arith.constant dense<0.000000e+00> : vector<16xf32>
    %29 = vector.multi_reduction <add>, %12, %cst_11 [1] : vector<16x128xf32> to vector<16xf32>
    %30 = vector.shape_cast %29 : vector<16xf32> to vector<16x1xf32>
    %31 = arith.mulf %12, %17 : vector<16x128xf32>
    %cst_12 = arith.constant dense<0.000000e+00> : vector<16xf32>
    %32 = vector.multi_reduction <add>, %31, %cst_12 [1] : vector<16x128xf32> to vector<16xf32>
    %33 = vector.shape_cast %32 : vector<16xf32> to vector<16x1xf32>
    %c0_13 = arith.constant 0 : index
    %c0_14 = arith.constant 0 : index
    %34 = vector.load %arg7[%c0_13, %c0_14] : memref<16x1xf32, #tpu.memory_space<vmem>>, vector<16x1xf32>
    %35 = arith.mulf %28, %30 : vector<16x1xf32>
    %36 = arith.subf %35, %33 : vector<16x1xf32>
    %37 = arith.addf %34, %36 : vector<16x1xf32>
    %c0_15 = arith.constant 0 : index
    %c0_16 = arith.constant 0 : index
    %38 = vector.load %arg7[%c0_15, %c0_16] : memref<16x1xf32, #tpu.memory_space<vmem>>, vector<16x1xf32>
    tpu.vector_store %arg7[%c0_15, %c0_16], %37 {strides = array<i32>} : memref<16x1xf32, #tpu.memory_space<vmem>>, vector<16x1xf32>,
    %c0_i32_17 = arith.constant 0 : i32
    %39 = arith.cmpi eq, %arg1, %c0_i32_17 : i32
    %40 = arith.extui %39 : i1 to i32
    %c0_i32_18 = arith.constant 0 : i32
    %41 = arith.cmpi ne, %40, %c0_i32_18 : i32
    scf.if %41 {
      %c0_19 = arith.constant 0 : index
      %c0_20 = arith.constant 0 : index
      %42 = vector.load %arg7[%c0_19, %c0_20] : memref<16x1xf32, #tpu.memory_space<vmem>>, vector<16x1xf32>
      %43 = vector.shape_cast %42 : vector<16x1xf32> to vector<1x16x1xf32>
      %cst_21 = arith.constant dense<0.000000e+00> : vector<1xf32>
      %44 = vector.multi_reduction <add>, %43, %cst_21 [1, 2] : vector<1x16x1xf32> to vector<1xf32>
      %45 = vector.shape_cast %44 : vector<1xf32> to vector<1x1x1xf32>
      %46 = vector.extract %45[0, 0, 0] : f32 from vector<1x1x1xf32>
      %cst_22 = arith.constant 7.812500e-03 : f32
      %47 = arith.mulf %46, %cst_22 : f32
      %48 = vector.broadcast %47 : f32 to vector<1x8x128xf32>
      %c0_23 = arith.constant 0 : index
      %c0_24 = arith.constant 0 : index
      %c0_25 = arith.constant 0 : index
      %49 = vector.load %arg5[%c0_23, %c0_24, %c0_25] : memref<1x8x128xf32, #tpu.memory_space<vmem>>, vector<1x8x128xf32>
      tpu.vector_store %arg5[%c0_23, %c0_24, %c0_25], %48 {strides = array<i32>} : memref<1x8x128xf32, #tpu.memory_space<vmem>>, vector<1x8x128xf32>,
    } else {
    }
    return
  }
  func.func @transform_0(%arg0: i32, %arg1: i32) -> (i32, i32) {
    %c1_i32 = arith.constant 1 : i32
    %0 = arith.muli %arg0, %c1_i32 : i32
    %1 = arith.addi %0, %arg1 : i32
    %c0_i32 = arith.constant 0 : i32
    %c0_i32_0 = arith.constant 0 : i32
    return %1, %c0_i32 : i32, i32
  }
  func.func @transform_1(%arg0: i32, %arg1: i32) -> (i32, i32) {
    %c0_i32 = arith.constant 0 : i32
    %c0_i32_0 = arith.constant 0 : i32
    %c0_i32_1 = arith.constant 0 : i32
    return %c0_i32, %c0_i32_0 : i32, i32
  }
  func.func @transform_2(%arg0: i32, %arg1: i32) -> (i32, i32) {
    %c1_i32 = arith.constant 1 : i32
    %0 = arith.muli %arg0, %c1_i32 : i32
    %1 = arith.addi %0, %arg1 : i32
    %c0_i32 = arith.constant 0 : i32
    %c0_i32_0 = arith.constant 0 : i32
    return %1, %c0_i32 : i32, i32
  }
  func.func @transform_3(%arg0: i32, %arg1: i32) -> (i32, i32, i32) {
    %c0_i32 = arith.constant 0 : i32
    %c0_i32_0 = arith.constant 0 : i32
    %c0_i32_1 = arith.constant 0 : i32
    return %arg0, %c0_i32, %c0_i32_0 : i32, i32, i32
  }
}

</mosaic_0001>

<bundles_post_ra>
// kernel: tpu_custom_call.1
= control target key start
LH: loop header
LB: loop body
LE: loop exit
PB: predicated region body
PF: predicated region fallthrough
CT: control target
= control target key end

     0   :  { %8 = vsyncpa [#allocation5], 0  ;;  %s471_s0 = inlined_call_operand.hbm [shape: f32[16,32], index: 0, kind: input, shape index: {}]   ;;  %s472_s1 = inlined_call_operand.hbm [shape: f32[32,128], index: 1, kind: input, shape index: {}]   ;;  %s473_s2 = inlined_call_operand.hbm [shape: f32[16,128], index: 2, kind: input, shape index: {}]   ;;  %s474_s3 = inlined_call_operand.hbm [shape: f32[1,8,128], index: 3, kind: output, shape index: {}]  }
   0x1   :  { %9 = vsyncpa [#allocation8], 0 }
   0x2   :  { %10 = vsyncpa [#allocation6], 0  ;;  %s422_s12 = smov [#allocation7]   ;;  %s423_s14 = smov [#allocation4]  }
   0x3   :  { %s32_s13 = sshll.u32 %s422_s12, 4  ;;  %s20_s15 = sshll.u32 %s423_s14, 4  ;;  %s33_s13 = int_to_ptr.vmem [resolvable:$true] %s32_s13  ;;  %s21_s15 = int_to_ptr.vmem [resolvable:$true] %s20_s15 }
   0x4   :  { %s344_s16 = scalar_lea.vmem %s33_s13, 512  ;;  %p349_p1 = scmp.lt.s32.totalorder %s33_s13, %s33_s13 }
   0x5   :  { %p345_p0 = scmp.ne.s32.totalorder %s33_s13, %s344_s16  ;;  %p350_p2 = scmp.lt.s32.totalorder %s344_s16, %s344_s16 }
   0x7   :  { %p351_p3 = por %p350_p2, %p349_p1 }
   0x9   :  { %p352_p4 = pnand %p351_p3, %p345_p0 }
   0xb   :  { %355 = shalt.err (!%p352_p4)
}
   0xc   :  { %s424_s17 = smov 128   ;;  %s425_s18 = smov 8  }
   0xd   :  { %38 = dma.hbm_to_vmem [thread:$0]  %s472_s1, 512, %s33_s13, [#allocation8], %s424_s17, %s424_s17, %s425_s18  }
   0xe   :  { %s364_s21 = scalar_lea.vmem %s21_s15, 256  ;;  %p369_p6 = scmp.lt.s32.totalorder %s21_s15, %s21_s15 }
   0xf   :  { %p365_p5 = scmp.ne.s32.totalorder %s21_s15, %s364_s21  ;;  %p370_p7 = scmp.lt.s32.totalorder %s364_s21, %s364_s21 }
  0x11   :  { %p371_p8 = por %p370_p7, %p369_p6 }
  0x13   :  { %p372_p9 = pnand %p371_p8, %p365_p5 }
  0x15   :  { %375 = shalt.err (!%p372_p9)
}
  0x16   :  { %26 = dma.hbm_to_vmem [thread:$0]  %s471_s0, 256, %s21_s15, [#allocation5], %s424_s17, %s424_s17, %s425_s18  }
  0x17   :  { %s426_s24 = smov [#allocation9]  }
  0x18   :  { %s48_s25 = sshll.u32 %s426_s24, 4  ;;  %s49_s25 = int_to_ptr.vmem [resolvable:$true] %s48_s25 }
  0x19   :  { %s384_s26 = scalar_lea.vmem %s49_s25, 256  ;;  %p389_p11 = scmp.lt.s32.totalorder %s49_s25, %s49_s25 }
  0x1a   :  { %p385_p10 = scmp.ne.s32.totalorder %s49_s25, %s384_s26  ;;  %p390_p12 = scmp.lt.s32.totalorder %s384_s26, %s384_s26 }
  0x1c   :  { %p391_p13 = por %p390_p12, %p389_p11 }
  0x1e   :  { %p392_p0 = pnand %p391_p13, %p385_p10 }
  0x20   :  { %395 = shalt.err (!%p392_p0)
}
  0x21   :  { %54 = dma.hbm_to_vmem [thread:$0]  %s473_s2, 256, %s49_s25, [#allocation8], %s424_s17, %s424_s17, %s425_s18  }
  0x22   :  { %416 = dma.done.wait [#allocation5], 256  }
  0x23   :  { %417 = vsyncadd [#allocation5], 4294967040 }
  0x24   :  { %418 = dma.done.wait [#allocation8], 768  }
  0x25   :  { %419 = vsyncadd [#allocation8], 4294966528  ;;  %v119_v0 = vld [vmem:[#allocation4] sm:$0xff]  ;;  %vm123_vm0 = vcmask 261120   ;;  %v120_v1 = vld [vmem:[#allocation4 + $0x8] sm:$0xff]  ;;  %v427_v23 = vmov 0.0   ;;  %v205_v53 = vlaneseq }
  0x26   :  { %v73_v2 = vld [vmem:[#allocation7] sm:$0xff]  ;;  %v121_v3 = vmul.f32 %v119_v0, %v119_v0  ;;  %v122_v4 = vmul.f32 %v120_v1, %v120_v1  ;;  %v74_v5 = vld [vmem:[#allocation7 + $0x8] sm:$0xff]  ;;  %v75_v6 = vld [vmem:[#allocation7 + $0x10] sm:$0xff]  ;;  %302 = vmatprep.subr.bf16.mxu0 %v427_v23  ;;  %vm428_vm1 = vmmov 0   ;;  %vm116_vm2 = vcmask 7168   ;;  %s429_s0 = smov [#allocation10]  }
  0x27   :  { %v76_v7 = vld [vmem:[#allocation7 + $0x18] sm:$0xff]  ;;  %v77_v8 = vmul.f32 %v73_v2, %v73_v2  ;;  %v78_v9 = vmul.f32 %v74_v5, %v74_v5  ;;  %v79_v10 = vmul.f32 %v75_v6, %v75_v6  ;;  %306 = vmatprep.mubr.msk.bf16.mxu0 %vm428_vm1, %v427_v23  ;;  %v136_v43 = vld [vmem:[#allocation9] sm:$0xff]  ;;  %v206_v54 = vand.u32 127, %v205_v53  ;;  %117 = vst.msk [vmem:[#allocation3] sm:$0xff] %vm116_vm2, %v427_v23  ;;  %v137_v59 = vld [vmem:[#allocation9 + $0x8] sm:$0xff]  ;;  %s267_s2 = sshll.u32 %s429_s0, 4  ;;  %s268_s2 = int_to_ptr.vmem [resolvable:$true] %s267_s2 }
  0x28   :  { %v124_v11 = vsel %vm123_vm0, %v121_v3, 0.0  ;;  %v80_v12 = vmul.f32 %v76_v7, %v76_v7  ;;  %v127_v14 = vsel %vm123_vm0, %v122_v4, 0.0  ;;  %118 = vst.msk [vmem:[#allocation3 + $0x8] sm:$0xff] %vm116_vm2, %v427_v23  ;;  %s396_s30 = scalar_lea.vmem %s268_s2, 128  ;;  %p401_p2 = scmp.lt.s32.totalorder %s268_s2, %s268_s2 }
  0x29   :  { %125 = vadd.xlane.f32.xlu0 %v124_v11  ;;  %v81_v13 = vadd.f32 %v78_v9, %v77_v8  ;;  %vm207_vm3 = vcmp.lt.s32.totalorder %v206_v54, 8  ;;  %p397_p1 = scmp.ne.s32.totalorder %s268_s2, %s396_s30  ;;  %p402_p3 = scmp.lt.s32.totalorder %s396_s30, %s396_s30 }
  0x2b   :  { %v82_v15 = vadd.f32 %v81_v13, %v79_v10  ;;  %p403_p4 = por %p402_p3, %p401_p2 }
  0x2d   :  { %128 = vadd.xlane.f32.xlu0 %v127_v14  ;;  %v83_v16 = vadd.f32 %v82_v15, %v80_v12  ;;  %p404_p5 = pnand %p403_p4, %p397_p1 }
  0x2f   :  { %v84_v17 = vrot.slane %v83_v16, 4  ;;  %v231_v11 = vld [vmem:[#allocation3 + $0x8] sm:$0xff] }
  0x31   :  { %v85_v18 = vadd.f32 %v84_v17, %v83_v16  ;;  %220 = vadd.xlane.f32.xlu0 %v136_v43 }
  0x33   :  { %v86_v19 = vrot.slane %v85_v18, 2 }
  0x35   :  { %v87_v20 = vadd.f32 %v86_v19, %v85_v18 }
  0x37   :  { %v88_v21 = vrot.slane %v87_v20, 1 }
  0x39   :  { %v89_v22 = vadd.f32 %v88_v21, %v87_v20 }
  0x3b   :  { %v90_v24 = vmax.f32 %v89_v22, 1e-24 }
  0x3d   :  { %322 = vrsqrt.f32 %v90_v24 }
  0x4a   :  { %v323_v25 = vpop.eup %322 }
  0x4b   :  { %v94_v26 = vmul.f32 %v323_v25, %v75_v6  ;;  %v95_v27 = vmul.f32 %v323_v25, %v76_v7  ;;  %v92_v28 = vmul.f32 %v323_v25, %v73_v2  ;;  %v93_v29 = vmul.f32 %v323_v25, %v74_v5  ;;  %v230_v6 = vld [vmem:[#allocation3] sm:$0xff] }
  0x4d   :  { %v296_v30 = vpack.c.bf16 %v95_v27, %v94_v26  ;;  %v291_v31 = vpack.c.bf16 %v93_v29, %v92_v28 }
  0x4f   :  { %298 = vst [vmem:[#allocation2 + $0x8] sm:$0xff] %v296_v30   ;;  %292 = vst [vmem:[#allocation2] sm:$0xff] %v291_v31  }
  0x56   :  { %v320_v32 = vld [vmem:[#allocation2 + $0x8] sm:$0xff]   ;;  %v321_v33 = vld [vmem:[#allocation2] sm:$0xff]  }
  0x57   :  { %303 = vmatpush3.bf16.msra.mxu0 %v320_v32 }
  0x58   :  { %304 = vmatprep.subr.bf16.mxu0 %v427_v23 }
  0x5b   :  { %305 = vmatpush3.bf16.msra.mxu0 %v321_v33 }
  0xb2   :  { %v126_v34 = vpop.xlane.xlu0 %125 }
  0xb3   :  { %v130_v35 = vmax.f32 %v126_v34, 1e-24 }
  0xb5   :  { %324 = vrsqrt.f32 %v130_v35 }
  0xb6   :  { %v129_v36 = vpop.xlane.xlu0 %128 }
  0xb7   :  { %v131_v37 = vmax.f32 %v129_v36, 1e-24 }
  0xb9   :  { %326 = vrsqrt.f32 %v131_v37 }
  0xba   :  { %v221_v63 = vpop.xlane.xlu0 %220 }
  0xc2   :  { %v325_v38 = vpop.eup %324 }
  0xc3   :  { %v134_v40 = vmul.f32 %v325_v38, %v119_v0 }
  0xc6   :  { %v327_v39 = vpop.eup %326 }
  0xc7   :  { %v135_v41 = vmul.f32 %v327_v39, %v120_v1 }
  0xc9   :  { %v138_v42 = vpack.c.bf16 %v135_v41, %v134_v40 }
  0xcb   :  { %307 = vmatmul.mubr.msk.bf16.vlgmr.msra.gmra.mxu0 %vm123_vm0, %v138_v42 }
 0x18b   :  { %v192_v44 = vpop.f32.mrf.mxu0 }
 0x18c   :  { %v199_v45 = vmul.f32 14.285714, %v192_v44 }
 0x18d   :  { %v308_v46 = vpop.f32.mrf.mxu0 }
 0x18e   :  { %v201_v47 = vmul.f32 1.442695, %v199_v45  ;;  %v224_v48 = vmul.f32 %v199_v45, %v136_v43 }
 0x18f   :  { %v195_v49 = vpop.f32.mrf.mxu0 }
 0x190   :  { %328 = vpow2.f32 %v201_v47  ;;  %v200_v50 = vmul.f32 14.285714, %v195_v49  ;;  %226 = vadd.xlane.f32.xlu0 %v224_v48 }
 0x191   :  { %v309_v51 = vpop.f32.mrf.mxu0 }
 0x192   :  { %v203_v52 = vmul.f32 1.442695, %v200_v50  ;;  %v225_v60 = vmul.f32 %v200_v50, %v137_v59 }
 0x194   :  { %330 = vpow2.f32 %v203_v52 }
 0x19d   :  { %v329_v55 = vpop.eup %328 }
 0x19e   :  { %v210_v56 = vsel %vm207_vm3, %v329_v55, 0.0 }
 0x19f   :  { %212 = vadd.xlane.f32.xlu1 %v210_v56 }
 0x1a1   :  { %v331_v57 = vpop.eup %330 }
 0x1a2   :  { %v211_v58 = vsel %vm207_vm3, %v331_v57, 0.0 }
 0x1a3   :  { %214 = vadd.xlane.f32.xlu1 %v211_v58 }
 0x1a7   :  { %222 = vadd.xlane.f32.xlu1 %v137_v59 }
 0x1ab   :  { %228 = vadd.xlane.f32.xlu1 %v225_v60 }
 0x219   :  { %v227_v5 = vpop.xlane.xlu0 %226 }
 0x228   :  { %v213_v61 = vpop.xlane.xlu1 %212 }
 0x229   :  { %332 = vlog2.f32 %v213_v61 }
 0x22c   :  { %v215_v62 = vpop.xlane.xlu1 %214 }
 0x22d   :  { %334 = vlog2.f32 %v215_v62 }
 0x230   :  { %v223_v2 = vpop.xlane.xlu1 %222 }
 0x234   :  { %v229_v12 = vpop.xlane.xlu1 %228 }
 0x236   :  { %v333_v0 = vpop.eup %332 }
 0x237   :  { %v217_v1 = vmul.f32 0.6931472, %v333_v0 }
 0x239   :  { %v232_v3 = vmul.f32 %v221_v63, %v217_v1 }
 0x23a   :  { %v335_v4 = vpop.eup %334 }
 0x23b   :  { %v234_v7 = vsub.f32 %v232_v3, %v227_v5  ;;  %v219_v8 = vmul.f32 0.6931472, %v335_v4 }
 0x23d   :  { %v236_v9 = vadd.f32 %v234_v7, %v230_v6  ;;  %v233_v10 = vmul.f32 %v223_v2, %v219_v8 }
 0x23f   :  { %239 = vst.msk [vmem:[#allocation3] sm:$0xff] %vm116_vm2, %v236_v9  ;;  %v235_v13 = vsub.f32 %v233_v10, %v229_v12 }
 0x241   :  { %v237_v14 = vadd.f32 %v235_v13, %v231_v11 }
 0x243   :  { %240 = vst.msk [vmem:[#allocation3 + $0x8] sm:$0xff] %vm116_vm2, %v237_v14 }
 0x246   :  { %v244_v15 = vld [vmem:[#allocation3] sm:$0xff] }
 0x247   :  { %v246_v17 = vsel %vm116_vm2, %v244_v15, 0.0 }
 0x24a   :  { %v245_v16 = vld [vmem:[#allocation3 + $0x8] sm:$0xff] }
 0x24b   :  { %v247_v18 = vsel %vm116_vm2, %v245_v16, 0.0 }
 0x24c   :  { %v248_v19 = vadd.f32 %v247_v18, %v246_v17 }
 0x24e   :  { %249 = vadd.xlane.f32.xlu0 %v248_v19 }
 0x2d7   :  { %v250_v20 = vpop.xlane.xlu0 %249 }
 0x2d8   :  { %v251_v21 = vrot.slane %v250_v20, 4 }
 0x2da   :  { %v252_v22 = vadd.f32 %v251_v21, %v250_v20 }
 0x2dc   :  { %v253_v23 = vrot.slane %v252_v22, 2 }
 0x2de   :  { %v254_v24 = vadd.f32 %v253_v23, %v252_v22 }
 0x2e0   :  { %v255_v25 = vrot.slane %v254_v24, 1 }
 0x2e2   :  { %v256_v26 = vadd.f32 %v255_v25, %v254_v24 }
 0x2e4   :  { %310 = vpush %v256_v26 }
 0x315   :  { %s311_s28 = spop %310 }
 0x316   :  { %s258_s29 = smul.f32 0.0078125, %s311_s28 }
 0x318   :  { %v259_v27 = vstv %s258_s29 }
 0x319   :  { %260 = vst [vmem:[#allocation10] sm:$0xff] %v259_v27 }
 0x31a   :  { %407 = shalt.err (!%p404_p5)
}
 0x31b   :  { %270 = dma.vmem_to_hbm [thread:$0]  %s268_s2, 128, %s474_s3, [#allocation6]  }
 0x31c   :  { %420 = dma.done.wait [#allocation6], 128  }
 0x31d   :  { %421 = vsyncadd [#allocation6], 4294967168 }
 0x31e   :  { %274 = vsyncpa [#allocation5], 1 }
 0x31f   :  { %275 = vsyncpa [#allocation8], 1 }
 0x320   :  { %276 = vsyncpa [#allocation6], 1 }

</bundles_post_ra>
